<compile_context>
chip_gen: v7x
topology: tpu7x:2x2x1
jax: 0.10.0
libtpu: 0.0.40
codegen_flags: <defaults>
</compile_context>

<pallas_src>
import functools

import jax
import jax.numpy as jnp
from jax.experimental import pallas as pl
from jax.experimental.pallas import tpu as pltpu


def _round_up(x, m):
    return (x + m - 1) // m * m


def _mlp_kernel(x_ref, *rest, num_layers, act_flags):
    # rest = (w_0, b_0, w_1, b_1, ..., w_{L-1}, b_{L-1}, alpha_ref, o_ref)
    #   x_ref:      (BB, Din_pad)          f32, one batch tile
    #   w_i:        (Din_pad_i, Dout_pad_i) f32  (BN-folded, transposed, zero-padded to 128 lanes)
    #   b_i:        (1, Dout_pad_i)         f32  (BN-folded bias)
    #   alpha_ref:  (L,)  f32 in SMEM       (PReLU alpha per layer; unused entries = 1.0)
    #   o_ref:      (BB, Dout_pad_last)     f32
    alpha_ref = rest[2 * num_layers]
    o_ref = rest[2 * num_layers + 1]

    h = x_ref[...]
    for i in range(num_layers):
        w = rest[2 * i][...]
        b = rest[2 * i + 1][...]
        h = jnp.dot(h, w, preferred_element_type=jnp.float32) + b
        if act_flags[i]:
            a = alpha_ref[i]                       # scalar read from SMEM
            h = jnp.where(h > 0.0, h, a * h)       # PReLU
    o_ref[...] = h.astype(o_ref.dtype)


def linear_layer_forward(x, params, *, block_b=128):
    """x: (B, in_dim) f32. params: list of per-layer dicts
       {"w": (out,in), "b": (out,), optional "bn": {...}, optional "prelu_alpha": scalar}.
       Returns (B, out_dim_last) f32."""
    B, d_in = x.shape
    num_layers = len(params)

    # ---- fold BN (eval mode) + bias into (in, out)-layout weights; pad features to 128 lanes ----
    folded = []
    act_flags = []
    alphas = []
    in_dim = d_in
    for layer in params:
        w = layer["w"].astype(jnp.float32)                       # (out, in)
        b = layer["b"].astype(jnp.float32)                       # (out,)
        out_dim = w.shape[0]
        if "bn" in layer and layer["bn"] is not None:
            bn = layer["bn"]
            scale = bn["gamma"] / jnp.sqrt(bn["var"] + bn["eps"])
            w = w * scale[:, None]
            b = (b - bn["mean"]) * scale + bn["beta"]
        w_t = jnp.transpose(w, (1, 0))                           # (in, out)
        in_pad = _round_up(in_dim, 128)
        out_pad = _round_up(out_dim, 128)
        w_p = jnp.zeros((in_pad, out_pad), jnp.float32).at[:in_dim, :out_dim].set(w_t)
        b_p = jnp.zeros((1, out_pad), jnp.float32).at[:, :out_dim].set(b[None, :])
        folded.append((w_p, b_p))
        has_act = ("prelu_alpha" in layer) and (layer["prelu_alpha"] is not None)
        act_flags.append(has_act)
        alphas.append(jnp.asarray(layer["prelu_alpha"] if has_act else 1.0,
                                  jnp.float32).reshape(()))
        in_dim = out_dim

    out_dim_last = in_dim
    out_pad_last = _round_up(out_dim_last, 128)
    in_pad_first = _round_up(d_in, 128)
    alpha_arr = jnp.stack(alphas)                                # (L,)  -> SMEM

    # ---- pad batch to a sublane-aligned tile and build the grid over batch tiles ----
    bb = block_b if B >= block_b else _round_up(max(B, 8), 8)
    b_pad = _round_up(B, bb)
    x_p = jnp.zeros((b_pad, in_pad_first), jnp.float32).at[:B, :d_in].set(
        x.astype(jnp.float32))

    in_specs = [pl.BlockSpec((bb, in_pad_first), lambda i: (i, 0))]
    flat_args = [x_p]
    for (w_p, b_p) in folded:
        in_specs.append(pl.BlockSpec(w_p.shape, lambda i: (0, 0)))   # weights resident
        in_specs.append(pl.BlockSpec(b_p.shape, lambda i: (0, 0)))
        flat_args.append(w_p)
        flat_args.append(b_p)
    in_specs.append(pl.BlockSpec(memory_space=pltpu.MemorySpace.SMEM))  # PReLU alphas
    flat_args.append(alpha_arr)

    out_spec = pl.BlockSpec((bb, out_pad_last), lambda i: (i, 0))       # lane-dense store

    o_pad = pl.pallas_call(
        functools.partial(_mlp_kernel, num_layers=num_layers,
                          act_flags=tuple(act_flags)),
        out_shape=jax.ShapeDtypeStruct((b_pad, out_pad_last), jnp.float32),
        grid=(b_pad // bb,),
        in_specs=in_specs,
        out_specs=out_spec,
        compiler_params=pltpu.CompilerParams(
            dimension_semantics=("parallel",)),
    )(*flat_args)

    return o_pad[:B, :out_dim_last]


def init_linear_layer_params(key, in_dim, h_dims, activation="PReLU", use_bn=True):
    """PyTorch-style init: Linear U(-1/sqrt(in), 1/sqrt(in)); BN gamma/beta & running stats
       randomized (so the BN fold is exercised); PReLU alpha = 0.25."""
    params = []
    layer_num = len(h_dims) - 1
    d = in_dim
    for i, out_dim in enumerate(h_dims):
        key, kw, kb, kg, kbe, km, kv = jax.random.split(key, 7)
        bound = 1.0 / float(jnp.sqrt(jnp.float32(d)))
        layer = {
            "w": jax.random.uniform(kw, (out_dim, d), jnp.float32, -bound, bound),
            "b": jax.random.uniform(kb, (out_dim,), jnp.float32, -bound, bound),
        }
        if activation is not None and i != layer_num:
            if use_bn:
                layer["bn"] = {
                    "gamma": jax.random.uniform(kg, (out_dim,), jnp.float32, 0.5, 1.5),
                    "beta": 0.1 * jax.random.normal(kbe, (out_dim,), jnp.float32),
                    "mean": 0.1 * jax.random.normal(km, (out_dim,), jnp.float32),
                    "var": jax.random.uniform(kv, (out_dim,), jnp.float32, 0.5, 1.5),
                    "eps": jnp.float32(1e-5),
                }
            layer["prelu_alpha"] = jnp.float32(0.25)
        params.append(layer)
        d = out_dim
    return params


def _reference(x, params):
    """Pure-JAX reference of the PyTorch forward (eval-mode BN)."""
    h = x.astype(jnp.float32)
    for layer in params:
        h = h @ layer["w"].T + layer["b"]
        if "bn" in layer and layer["bn"] is not None:
            bn = layer["bn"]
            h = (h - bn["mean"]) / jnp.sqrt(bn["var"] + bn["eps"]) * bn["gamma"] + bn["beta"]
        if "prelu_alpha" in layer and layer["prelu_alpha"] is not None:
            a = layer["prelu_alpha"]
            h = jnp.where(h > 0, h, a * h)
    return h


if __name__ == "__main__":
    B, IN_DIM = 4, 16
    H_DIMS = [32, 8]          # two layers: Linear->BN->PReLU, then Linear

    key = jax.random.PRNGKey(0)
    kx, kp = jax.random.split(key)
    x = jax.random.normal(kx, (B, IN_DIM), jnp.float32)
    params = init_linear_layer_params(kp, IN_DIM, H_DIMS, activation="PReLU", use_bn=True)

    fwd = jax.jit(linear_layer_forward)
    o = fwd(x, params)
    jax.block_until_ready(o)

    ref = _reference(x, params)
    assert o.shape == (B, H_DIMS[-1]), o.shape
    assert jnp.allclose(o, ref, atol=1e-4, rtol=1e-4), float(jnp.max(jnp.abs(o - ref)))
    print("KERNEL_OK")
</pallas_src>

<mosaic_0001>
module attributes {stable_mosaic.version = 11 : i64} {
  func.func @_mlp_kernel(%arg0: i32, %arg1: memref<8x128xf32, #tpu.memory_space<vmem>>, %arg2: memref<128x128xf32, #tpu.memory_space<vmem>>, %arg3: memref<1x128xf32, #tpu.memory_space<vmem>>, %arg4: memref<128x128xf32, #tpu.memory_space<vmem>>, %arg5: memref<1x128xf32, #tpu.memory_space<vmem>>, %arg6: memref<2xf32, #tpu.memory_space<smem>>, %arg7: memref<8x128xf32, #tpu.memory_space<vmem>>) attributes {dimension_semantics = [#tpu.dimension_semantics<parallel>], iteration_bounds = array<i64: 1>, scalar_prefetch = 0 : i64, scratch_operands = 0 : i64, tpu.core_type = #tpu.core_type<tc>, window_params = [{transform_indices = @transform_0, window_bounds = array<i64: 8, 128>}, {pipeline_mode = #tpu.pipeline_mode<synchronous>, transform_indices = @transform_1, window_bounds = array<i64: 128, 128>}, {pipeline_mode = #tpu.pipeline_mode<synchronous>, transform_indices = @transform_2, window_bounds = array<i64: 1, 128>}, {pipeline_mode = #tpu.pipeline_mode<synchronous>, transform_indices = @transform_3, window_bounds = array<i64: 128, 128>}, {pipeline_mode = #tpu.pipeline_mode<synchronous>, transform_indices = @transform_4, window_bounds = array<i64: 1, 128>}, {transform_indices = @transform_5, window_bounds = array<i64: 2>}, {transform_indices = @transform_6, window_bounds = array<i64: 8, 128>}]} {
    %c0 = arith.constant 0 : index
    %c0_0 = arith.constant 0 : index
    %0 = vector.load %arg1[%c0, %c0_0] : memref<8x128xf32, #tpu.memory_space<vmem>>, vector<8x128xf32>
    %c0_1 = arith.constant 0 : index
    %c0_2 = arith.constant 0 : index
    %1 = vector.load %arg2[%c0_1, %c0_2] : memref<128x128xf32, #tpu.memory_space<vmem>>, vector<128x128xf32>
    %c0_3 = arith.constant 0 : index
    %c0_4 = arith.constant 0 : index
    %2 = vector.load %arg3[%c0_3, %c0_4] : memref<1x128xf32, #tpu.memory_space<vmem>>, vector<1x128xf32>
    %cst = arith.constant dense<0.000000e+00> : vector<8x128xf32>
    %3 = tpu.matmul %0, %1, %cst {dimension_numbers = #tpu.dot_dimension_numbers<[1], [0], [0], [1], [0, 0, 1, 1], [], []>} : vector<8x128xf32>, vector<128x128xf32>, vector<8x128xf32> -> vector<8x128xf32>
    %4 = vector.broadcast %2 : vector<1x128xf32> to vector<8x128xf32>
    %5 = arith.addf %3, %4 : vector<8x128xf32>
    %c0_5 = arith.constant 0 : index
    %6 = memref.load %arg6[%c0_5] : memref<2xf32, #tpu.memory_space<smem>>
    %cst_6 = arith.constant 0.000000e+00 : f32
    %7 = vector.broadcast %cst_6 : f32 to vector<8x128xf32>
    %8 = arith.cmpf ogt, %5, %7 : vector<8x128xf32>
    %9 = vector.broadcast %6 : f32 to vector<8x128xf32>
    %10 = arith.mulf %9, %5 : vector<8x128xf32>
    %11 = arith.select %8, %5, %10 : vector<8x128xi1>, vector<8x128xf32>
    %c0_7 = arith.constant 0 : index
    %c0_8 = arith.constant 0 : index
    %12 = vector.load %arg4[%c0_7, %c0_8] : memref<128x128xf32, #tpu.memory_space<vmem>>, vector<128x128xf32>
    %c0_9 = arith.constant 0 : index
    %c0_10 = arith.constant 0 : index
    %13 = vector.load %arg5[%c0_9, %c0_10] : memref<1x128xf32, #tpu.memory_space<vmem>>, vector<1x128xf32>
    %cst_11 = arith.constant dense<0.000000e+00> : vector<8x128xf32>
    %14 = tpu.matmul %11, %12, %cst_11 {dimension_numbers = #tpu.dot_dimension_numbers<[1], [0], [0], [1], [0, 0, 1, 1], [], []>} : vector<8x128xf32>, vector<128x128xf32>, vector<8x128xf32> -> vector<8x128xf32>
    %15 = vector.broadcast %13 : vector<1x128xf32> to vector<8x128xf32>
    %16 = arith.addf %14, %15 : vector<8x128xf32>
    %c0_12 = arith.constant 0 : index
    %c0_13 = arith.constant 0 : index
    %17 = vector.load %arg7[%c0_12, %c0_13] : memref<8x128xf32, #tpu.memory_space<vmem>>, vector<8x128xf32>
    tpu.vector_store %arg7[%c0_12, %c0_13], %16 {strides = array<i32>} : memref<8x128xf32, #tpu.memory_space<vmem>>, vector<8x128xf32>,
    return
  }
  func.func @transform_0(%arg0: i32) -> (i32, i32) {
    %c0_i32 = arith.constant 0 : i32
    %c0_i32_0 = arith.constant 0 : i32
    return %arg0, %c0_i32 : i32, i32
  }
  func.func @transform_1(%arg0: i32) -> (i32, i32) {
    %c0_i32 = arith.constant 0 : i32
    %c0_i32_0 = arith.constant 0 : i32
    %c0_i32_1 = arith.constant 0 : i32
    return %c0_i32, %c0_i32_0 : i32, i32
  }
  func.func @transform_2(%arg0: i32) -> (i32, i32) {
    %c0_i32 = arith.constant 0 : i32
    %c0_i32_0 = arith.constant 0 : i32
    %c0_i32_1 = arith.constant 0 : i32
    return %c0_i32, %c0_i32_0 : i32, i32
  }
  func.func @transform_3(%arg0: i32) -> (i32, i32) {
    %c0_i32 = arith.constant 0 : i32
    %c0_i32_0 = arith.constant 0 : i32
    %c0_i32_1 = arith.constant 0 : i32
    return %c0_i32, %c0_i32_0 : i32, i32
  }
  func.func @transform_4(%arg0: i32) -> (i32, i32) {
    %c0_i32 = arith.constant 0 : i32
    %c0_i32_0 = arith.constant 0 : i32
    %c0_i32_1 = arith.constant 0 : i32
    return %c0_i32, %c0_i32_0 : i32, i32
  }
  func.func @transform_5(%arg0: i32) -> i32 {
    %c0_i32 = arith.constant 0 : i32
    %c0_i32_0 = arith.constant 0 : i32
    return %c0_i32 : i32
  }
  func.func @transform_6(%arg0: i32) -> (i32, i32) {
    %c0_i32 = arith.constant 0 : i32
    %c0_i32_0 = arith.constant 0 : i32
    return %arg0, %c0_i32 : i32, i32
  }
}

</mosaic_0001>

<bundles_post_ra>
// kernel: linear_layer_forward.1
= control target key start
LH: loop header
LB: loop body
LE: loop exit
PB: predicated region body
PF: predicated region fallthrough
CT: control target
= control target key end

     0   :  { %11 = vsyncpa [#allocation3], 0  ;;  %s572_s0 = inlined_call_operand.vmem [shape: f32[8,128], index: 0, kind: input, shape index: {}]   ;;  %s573_s1 = inlined_call_operand.vmem [shape: f32[128,128], index: 1, kind: input, shape index: {}]   ;;  %s574_s2 = inlined_call_operand.vmem [shape: f32[1,128], index: 2, kind: input, shape index: {}]   ;;  %s575_s3 = inlined_call_operand.vmem [shape: f32[128,128], index: 3, kind: input, shape index: {}]   ;;  %s576_s4 = inlined_call_operand.vmem [shape: f32[1,128], index: 4, kind: input, shape index: {}]   ;;  %s577_s5 = inlined_call_operand.vmem [shape: f32[2], index: 5, kind: input, shape index: {}]   ;;  %s578_s6 = inlined_call_operand.vmem [shape: f32[8,128], index: 6, kind: output, shape index: {}]  }
   0x1   :  { %s28_s23 = sshll.u32 %s577_s5, 4  ;;  %s29_s23 = int_to_ptr.vmem [resolvable:$true] %s28_s23 }
   0x2   :  { %s392_s24 = scalar_lea.vmem %s29_s23, 16  ;;  %p397_p1 = scmp.lt.s32.totalorder %s29_s23, %s29_s23 }
   0x3   :  { %p393_p0 = scmp.ne.s32.totalorder %s29_s23, %s392_s24  ;;  %p398_p2 = scmp.lt.s32.totalorder %s392_s24, %s392_s24 }
   0x5   :  { %p399_p3 = por %p398_p2, %p397_p1 }
   0x7   :  { %p400_p4 = pnand %p399_p3, %p393_p0 }
   0x9   :  { %403 = shalt.err (!%p400_p4)
}
   0xa   :  { %s406_s25 = smov [#allocation2]  }
   0xb   :  { %31 = dma.vmem_to_smem %s29_s23, 16, %s406_s25, [#allocation3]  }
   0xc   :  { %404 = dma.done.wait [#allocation3], 16  }
   0xd   :  { %405 = vsyncadd [#allocation3], 4294967280 }
   0xe   :  { %35 = sfence }
   0xf   :  { %v37_v0 = vld [vmem:[%s573_s1] sm:$0xff]  ;;  %v38_v1 = vld [vmem:[%s573_s1 + $0x8] sm:$0xff]  ;;  %v39_v2 = vld [vmem:[%s573_s1 + $0x10] sm:$0xff]  ;;  %v407_v3 = vmov 0.0|0.0   ;;  %vm408_vm0 = vmmov 0   ;;  %v409_v6 = vmov 0.0  }
  0x10   :  { %340 = vmatprep.subr.bf16.mxu0 %v407_v3  ;;  %v341_v4 = vpack.c.bf16 %v38_v1, %v37_v0  ;;  %v40_v5 = vld [vmem:[%s573_s1 + $0x18] sm:$0xff]  ;;  %302 = vmatprep.mubr.msk.f32.mxu0 %vm408_vm0, %v409_v6  ;;  %v41_v8 = vld [vmem:[%s573_s1 + $0x20] sm:$0xff]  ;;  %v42_v9 = vld [vmem:[%s573_s1 + $0x28] sm:$0xff]  ;;  %s130_s16 = sld [smem:[#allocation2]] }
  0x11   :  { %364 = vmatprep.subr.bf16.mxu1 %v407_v3  ;;  %337 = vmatprep.mubr.msk.f32.mxu1 %vm408_vm0, %v409_v6  ;;  %v344_v7 = vpack.c.bf16 %v40_v5, %v39_v2  ;;  %v135_v10 = vld [vmem:[%s575_s3] sm:$0xff]  ;;  %v136_v11 = vld [vmem:[%s575_s3 + $0x8] sm:$0xff]  ;;  %v137_v12 = vld [vmem:[%s575_s3 + $0x10] sm:$0xff]  ;;  %v347_v14 = vpack.c.bf16 %v42_v9, %v41_v8 }
  0x12   :  { %342 = vmatpush3.bf16.msra.mxu0 %v341_v4  ;;  %v138_v13 = vld [vmem:[%s575_s3 + $0x18] sm:$0xff]  ;;  %v365_v15 = vpack.c.bf16 %v136_v11, %v135_v10  ;;  %v43_v16 = vld [vmem:[%s573_s1 + $0x30] sm:$0xff]  ;;  %v139_v19 = vld [vmem:[%s575_s3 + $0x20] sm:$0xff] }
  0x13   :  { %343 = vmatprep.subr.bf16.mxu0 %v407_v3  ;;  %v44_v17 = vld [vmem:[%s573_s1 + $0x38] sm:$0xff]  ;;  %v368_v18 = vpack.c.bf16 %v138_v13, %v137_v12  ;;  %v140_v20 = vld [vmem:[%s575_s3 + $0x28] sm:$0xff]  ;;  %v45_v22 = vld [vmem:[%s573_s1 + $0x40] sm:$0xff] }
  0x14   :  { %366 = vmatpush3.bf16.msra.mxu1 %v365_v15  ;;  %v350_v21 = vpack.c.bf16 %v44_v17, %v43_v16  ;;  %v46_v23 = vld [vmem:[%s573_s1 + $0x48] sm:$0xff]  ;;  %v371_v24 = vpack.c.bf16 %v140_v20, %v139_v19  ;;  %v141_v25 = vld [vmem:[%s575_s3 + $0x30] sm:$0xff]  ;;  %v142_v26 = vld [vmem:[%s575_s3 + $0x38] sm:$0xff] }
  0x15   :  { %367 = vmatprep.subr.bf16.mxu1 %v407_v3  ;;  %v353_v27 = vpack.c.bf16 %v46_v23, %v45_v22  ;;  %v47_v28 = vld [vmem:[%s573_s1 + $0x50] sm:$0xff]  ;;  %v48_v29 = vld [vmem:[%s573_s1 + $0x58] sm:$0xff]  ;;  %v374_v30 = vpack.c.bf16 %v142_v26, %v141_v25  ;;  %v143_v31 = vld [vmem:[%s575_s3 + $0x40] sm:$0xff] }
  0x16   :  { %345 = vmatpush3.bf16.msra.mxu0 %v344_v7  ;;  %v144_v32 = vld [vmem:[%s575_s3 + $0x48] sm:$0xff]  ;;  %v356_v33 = vpack.c.bf16 %v48_v29, %v47_v28  ;;  %v49_v34 = vld [vmem:[%s573_s1 + $0x60] sm:$0xff]  ;;  %v145_v37 = vld [vmem:[%s575_s3 + $0x50] sm:$0xff]  ;;  %v132_v53 = vstv %s130_s16 }
  0x17   :  { %346 = vmatprep.subr.bf16.mxu0 %v407_v3  ;;  %v50_v35 = vld [vmem:[%s573_s1 + $0x68] sm:$0xff]  ;;  %v377_v36 = vpack.c.bf16 %v144_v32, %v143_v31  ;;  %v146_v38 = vld [vmem:[%s575_s3 + $0x58] sm:$0xff]  ;;  %v51_v40 = vld [vmem:[%s573_s1 + $0x70] sm:$0xff] }
  0x18   :  { %369 = vmatpush3.bf16.msra.mxu1 %v368_v18  ;;  %v359_v39 = vpack.c.bf16 %v50_v35, %v49_v34  ;;  %v52_v41 = vld [vmem:[%s573_s1 + $0x78] sm:$0xff]  ;;  %v380_v42 = vpack.c.bf16 %v146_v38, %v145_v37  ;;  %v147_v43 = vld [vmem:[%s575_s3 + $0x60] sm:$0xff]  ;;  %v148_v44 = vld [vmem:[%s575_s3 + $0x68] sm:$0xff] }
  0x19   :  { %370 = vmatprep.subr.bf16.mxu1 %v407_v3  ;;  %v362_v45 = vpack.c.bf16 %v52_v41, %v51_v40  ;;  %v383_v46 = vpack.c.bf16 %v148_v44, %v147_v43  ;;  %v36_v47 = vld [vmem:[%s572_s0] sm:$0xff]  ;;  %v149_v48 = vld [vmem:[%s575_s3 + $0x70] sm:$0xff]  ;;  %v150_v49 = vld [vmem:[%s575_s3 + $0x78] sm:$0xff] }
  0x1a   :  { %348 = vmatpush3.bf16.msra.mxu0 %v347_v14  ;;  %v386_v50 = vpack.c.bf16 %v150_v49, %v149_v48  ;;  %v234_v51 = vld [vmem:[%s574_s2] ss:$0 sm:$0xff] }
  0x1b   :  { %349 = vmatprep.subr.bf16.mxu0 %v407_v3  ;;  %v235_v58 = vld [vmem:[%s576_s4] ss:$0 sm:$0xff] }
  0x1c   :  { %372 = vmatpush3.bf16.msra.mxu1 %v371_v24 }
  0x1d   :  { %373 = vmatprep.subr.bf16.mxu1 %v407_v3 }
  0x1e   :  { %351 = vmatpush3.bf16.msra.mxu0 %v350_v21 }
  0x1f   :  { %352 = vmatprep.subr.bf16.mxu0 %v407_v3 }
  0x20   :  { %375 = vmatpush3.bf16.msra.mxu1 %v374_v30 }
  0x21   :  { %376 = vmatprep.subr.bf16.mxu1 %v407_v3 }
  0x22   :  { %354 = vmatpush3.bf16.msra.mxu0 %v353_v27 }
  0x23   :  { %355 = vmatprep.subr.bf16.mxu0 %v407_v3 }
  0x24   :  { %378 = vmatpush3.bf16.msra.mxu1 %v377_v36 }
  0x25   :  { %379 = vmatprep.subr.bf16.mxu1 %v407_v3 }
  0x26   :  { %357 = vmatpush3.bf16.msra.mxu0 %v356_v33 }
  0x27   :  { %358 = vmatprep.subr.bf16.mxu0 %v407_v3 }
  0x28   :  { %381 = vmatpush3.bf16.msra.mxu1 %v380_v42 }
  0x29   :  { %382 = vmatprep.subr.bf16.mxu1 %v407_v3 }
  0x2a   :  { %360 = vmatpush3.bf16.msra.mxu0 %v359_v39 }
  0x2b   :  { %361 = vmatprep.subr.bf16.mxu0 %v407_v3 }
  0x2c   :  { %384 = vmatpush3.bf16.msra.mxu1 %v383_v46 }
  0x2d   :  { %385 = vmatprep.subr.bf16.mxu1 %v407_v3 }
  0x2e   :  { %363 = vmatpush3.bf16.msra.mxu0 %v362_v45 }
  0x30   :  { %387 = vmatpush3.bf16.msra.mxu1 %v386_v50 }
  0x31   :  { %303 = vmatmul.mubr.f32.vlgmr.msra.gmra.mrb[0].mxu0 %v36_v47 }
 0x104   :  { %v126_v52 = vpop.f32.mrb[0].mxu0 }
 0x105   :  { %v127_v54 = vadd.f32 %v234_v51, %v126_v52  ;;  %v304_v55 = vpop.f32.mrb[1].mxu0 }
 0x107   :  { %v133_v56 = vmul.f32 %v132_v53, %v127_v54  ;;  %vm131_vm1 = vcmp.gt.f32.partialorder %v127_v54, 0.0 }
 0x109   :  { %v134_v57 = vsel %vm131_vm1, %v127_v54, %v133_v56 }
 0x10a   :  { %338 = vmatmul.mubr.f32.vlgmr.msra.gmra.mrb[0].mxu1 %v134_v57 }
 0x1dd   :  { %v224_v59 = vpop.f32.mrb[0].mxu1 }
 0x1de   :  { %v225_v60 = vadd.f32 %v235_v58, %v224_v59  ;;  %v339_v61 = vpop.f32.mrb[1].mxu1 }
 0x1e0   :  { %228 = vst [vmem:[%s578_s6] sm:$0xff] %v225_v60 }
 0x1e1   :  { %233 = vsyncpa [#allocation3], 1 }

</bundles_post_ra>
